<compile_context>
chip_gen: v7x
topology: tpu7x:2x2x1
jax: 0.10.0
libtpu: 0.0.40
codegen_flags: <defaults>
</compile_context>

<pallas_src>
import jax
import jax.numpy as jnp
from jax.experimental import pallas as pl
from jax.experimental.pallas import tpu as pltpu


def dqn_kernel(idx_ref, table_ref, out_ref):
    # idx_ref: (TB, 1) int32 token indices for this batch tile.
    # table_ref: (Vp, Ap) f32 fully-folded network table (zero-padded).
    idx = idx_ref[...]                                        # (TB, 1)
    tb = idx.shape[0]
    vp = table_ref.shape[0]

    # onehot(idx) @ table  ==  table[idx]   (exact one-hot selection).
    iota = jax.lax.broadcasted_iota(jnp.int32, (tb, vp), 1)   # (TB, Vp)
    onehot = (iota == idx).astype(jnp.float32)                # (TB, Vp)
    out_ref[...] = jnp.dot(onehot, table_ref[...],
                           preferred_element_type=jnp.float32)


def dqn_forward(x_idx, emb, w1, b1, w2, b2, w3, b3):
    """x_idx: (B,) integer observations. Returns (B, action_space) float32."""
    B = x_idx.shape[0]
    V, _E = emb.shape
    A = w3.shape[1]

    # ---- Fold the whole network into a (V, A) table (one-off tiny XLA op).
    h1 = jnp.maximum(jnp.dot(emb, w1, preferred_element_type=jnp.float32) + b1, 0.0)
    h2 = jnp.maximum(jnp.dot(h1, w2, preferred_element_type=jnp.float32) + b2, 0.0)
    table = jnp.dot(h2, w3, preferred_element_type=jnp.float32) + b3      # (V, A)

    # ---- Lane-dense / sublane-aligned padding of the table (exact: zeros).
    Ap = ((A + 127) // 128) * 128          # lane axis -> multiple of 128
    Vp = ((V + 7) // 8) * 8                # sublane axis -> multiple of 8
    if (Vp, Ap) != (V, A):
        table = jnp.pad(table, ((0, Vp - V), (0, Ap - A)))

    # ---- Clamp indices (jnp.take semantics) and shape for the kernel.
    idx = jnp.clip(x_idx.astype(jnp.int32), 0, V - 1).reshape(B, 1)

    # ---- Grid: fewest steps possible (step overhead dominates). Use 2
    # balanced steps only for large batches so v7x can use both TensorCores.
    num_steps = 2 if B >= 256 else 1
    TB = (((B + num_steps - 1) // num_steps) + 7) // 8 * 8     # 8-sublane tiles
    Bp = TB * num_steps
    if Bp != B:
        idx = jnp.pad(idx, ((0, Bp - B), (0, 0)))   # pad rows use index 0

    flops = 2 * Bp * Vp * Ap
    bytes_accessed = idx.size * 4 + table.size * 4 + Bp * Ap * 4

    out = pl.pallas_call(
        dqn_kernel,
        out_shape=jax.ShapeDtypeStruct((Bp, Ap), jnp.float32),
        grid=(num_steps,),
        in_specs=[
            pl.BlockSpec((TB, 1), lambda i: (i, 0)),    # indices: tiled on batch
            pl.BlockSpec((Vp, Ap), lambda i: (0, 0)),   # folded table (replicated)
        ],
        out_specs=pl.BlockSpec((TB, Ap), lambda i: (i, 0)),
        compiler_params=pltpu.CompilerParams(
            dimension_semantics=("parallel",)),          # v7x: shard over 2 TCs
        cost_estimate=pl.CostEstimate(flops=flops, transcendentals=0,
                                      bytes_accessed=bytes_accessed),
    )(idx, table)
    return out[:B, :A]


def dqn_reference(x_idx, emb, w1, b1, w2, b2, w3, b3):
    x = jnp.take(emb, x_idx.astype(jnp.int32), axis=0)
    h1 = jnp.maximum(x @ w1 + b1, 0.0)
    h2 = jnp.maximum(h1 @ w2 + b2, 0.0)
    return h2 @ w3 + b3


if __name__ == "__main__":
    # Shapes consistent with DQN(obs_space, action_space, embedding_dim=64).
    obs_space = 32
    action_space = 4
    embedding_dim = 64
    hidden = 64
    batch = 8

    key = jax.random.PRNGKey(0)
    k_emb, k_w1, k_b1, k_w2, k_b2, k_w3, k_b3, k_x, k_x2, k_x3 = jax.random.split(key, 10)

    # Linear weights stored as (in_features, out_features) == PyTorch W.T .
    emb = jax.random.normal(k_emb, (obs_space, embedding_dim), jnp.float32) * 0.1
    w1 = jax.random.normal(k_w1, (embedding_dim, hidden), jnp.float32) * 0.1
    b1 = jax.random.normal(k_b1, (hidden,), jnp.float32) * 0.1
    w2 = jax.random.normal(k_w2, (hidden, hidden), jnp.float32) * 0.1
    b2 = jax.random.normal(k_b2, (hidden,), jnp.float32) * 0.1
    w3 = jax.random.normal(k_w3, (hidden, action_space), jnp.float32) * 0.1
    b3 = jax.random.normal(k_b3, (action_space,), jnp.float32) * 0.1

    # Small batch (single grid step).
    x = jax.random.randint(k_x, (batch,), 0, obs_space, jnp.int32)
    out = jax.block_until_ready(dqn_forward(x, emb, w1, b1, w2, b2, w3, b3))
    ref = dqn_reference(x, emb, w1, b1, w2, b2, w3, b3)
    assert out.shape == (batch, action_space)
    assert jnp.allclose(out, ref, atol=1e-5, rtol=1e-5), "mismatch vs reference (B=8)"

    # Odd-ish batch: single grid step, tile sized to the batch (no dead rows).
    batch2 = 160
    x2 = jax.random.randint(k_x2, (batch2,), 0, obs_space, jnp.int32)
    out2 = jax.block_until_ready(dqn_forward(x2, emb, w1, b1, w2, b2, w3, b3))
    ref2 = dqn_reference(x2, emb, w1, b1, w2, b2, w3, b3)
    assert out2.shape == (batch2, action_space)
    assert jnp.allclose(out2, ref2, atol=1e-5, rtol=1e-5), "mismatch vs reference (B=160)"

    # Large batch: exercises the 2-step grid path (both TCs on v7x).
    batch3 = 300
    x3 = jax.random.randint(k_x3, (batch3,), 0, obs_space, jnp.int32)
    out3 = jax.block_until_ready(dqn_forward(x3, emb, w1, b1, w2, b2, w3, b3))
    ref3 = dqn_reference(x3, emb, w1, b1, w2, b2, w3, b3)
    assert out3.shape == (batch3, action_space)
    assert jnp.allclose(out3, ref3, atol=1e-5, rtol=1e-5), "mismatch vs reference (B=300)"

    print("KERNEL_OK")
</pallas_src>

<mosaic_0001>
module attributes {stable_mosaic.version = 11 : i64} {
  func.func @dqn_kernel(%arg0: i32, %arg1: memref<8x1xi32, #tpu.memory_space<vmem>>, %arg2: memref<32x128xf32, #tpu.memory_space<vmem>>, %arg3: memref<8x128xf32, #tpu.memory_space<vmem>>) attributes {dimension_semantics = [#tpu.dimension_semantics<parallel>], iteration_bounds = array<i64: 1>, scalar_prefetch = 0 : i64, scratch_operands = 0 : i64, tpu.core_type = #tpu.core_type<tc>, window_params = [{transform_indices = @transform_0, window_bounds = array<i64: 8, 1>}, {pipeline_mode = #tpu.pipeline_mode<synchronous>, transform_indices = @transform_1, window_bounds = array<i64: 32, 128>}, {transform_indices = @transform_2, window_bounds = array<i64: 8, 128>}]} {
    %c0 = arith.constant 0 : index
    %c0_0 = arith.constant 0 : index
    %0 = vector.load %arg1[%c0, %c0_0] : memref<8x1xi32, #tpu.memory_space<vmem>>, vector<8x1xi32>
    %1 = tpu.iota {dimensions = array<i32: 1>} : vector<8x32xi32>
    %2 = vector.broadcast %0 : vector<8x1xi32> to vector<8x32xi32>
    %3 = arith.cmpi eq, %1, %2 : vector<8x32xi32>
    %4 = arith.extui %3 : vector<8x32xi1> to vector<8x32xi32>
    %5 = arith.sitofp %4 : vector<8x32xi32> to vector<8x32xf32>
    %c0_1 = arith.constant 0 : index
    %c0_2 = arith.constant 0 : index
    %6 = vector.load %arg2[%c0_1, %c0_2] : memref<32x128xf32, #tpu.memory_space<vmem>>, vector<32x128xf32>
    %cst = arith.constant dense<0.000000e+00> : vector<8x128xf32>
    %7 = tpu.matmul %5, %6, %cst {dimension_numbers = #tpu.dot_dimension_numbers<[1], [0], [0], [1], [0, 0, 1, 1], [], []>} : vector<8x32xf32>, vector<32x128xf32>, vector<8x128xf32> -> vector<8x128xf32>
    %c0_3 = arith.constant 0 : index
    %c0_4 = arith.constant 0 : index
    %8 = vector.load %arg3[%c0_3, %c0_4] : memref<8x128xf32, #tpu.memory_space<vmem>>, vector<8x128xf32>
    tpu.vector_store %arg3[%c0_3, %c0_4], %7 {strides = array<i32>} : memref<8x128xf32, #tpu.memory_space<vmem>>, vector<8x128xf32>,
    return
  }
  func.func @transform_0(%arg0: i32) -> (i32, i32) {
    %c0_i32 = arith.constant 0 : i32
    %c0_i32_0 = arith.constant 0 : i32
    return %arg0, %c0_i32 : i32, i32
  }
  func.func @transform_1(%arg0: i32) -> (i32, i32) {
    %c0_i32 = arith.constant 0 : i32
    %c0_i32_0 = arith.constant 0 : i32
    %c0_i32_1 = arith.constant 0 : i32
    return %c0_i32, %c0_i32_0 : i32, i32
  }
  func.func @transform_2(%arg0: i32) -> (i32, i32) {
    %c0_i32 = arith.constant 0 : i32
    %c0_i32_0 = arith.constant 0 : i32
    return %arg0, %c0_i32 : i32, i32
  }
}

</mosaic_0001>

<bundles_post_ra>
// kernel: tpu_custom_call.1
= control target key start
LH: loop header
LB: loop body
LE: loop exit
PB: predicated region body
PF: predicated region fallthrough
CT: control target
= control target key end

     0   :  { %7 = vsyncpa [#allocation3], 0  ;;  %s260_s0 = inlined_call_operand.vmem [shape: s32[8,1], index: 0, kind: input, shape index: {}]   ;;  %s261_s1 = inlined_call_operand.hbm [shape: f32[32,128], index: 1, kind: input, shape index: {}]   ;;  %s262_s2 = inlined_call_operand.hbm [shape: f32[8,128], index: 2, kind: output, shape index: {}]  }
   0x1   :  { %8 = vsyncpa [#allocation4], 0  ;;  %s210_s9 = smov [#allocation2]   ;;  %s162_s13 = scalar_lea.hbm %s261_s1, 512 }
   0x2   :  { %s16_s10 = sshll.u32 %s210_s9, 4  ;;  %p163_p0 = scmp.ne.s32.totalorder %s261_s1, %s162_s13  ;;  %s17_s10 = int_to_ptr.vmem [resolvable:$true] %s16_s10 }
   0x3   :  { %p166_p1 = scmp.lt.u32.totalorder %s162_s13, %s261_s1 }
   0x5   :  { %p168_p2 = pnand %p166_p1, %p163_p0 }
   0x7   :  { %171 = shalt.err (!%p168_p2)
}
   0x8   :  { %s172_s18 = scalar_lea.vmem %s17_s10, 512  ;;  %p177_p4 = scmp.lt.s32.totalorder %s17_s10, %s17_s10 }
   0x9   :  { %p173_p3 = scmp.ne.s32.totalorder %s17_s10, %s172_s18  ;;  %p178_p5 = scmp.lt.s32.totalorder %s172_s18, %s172_s18 }
   0xb   :  { %p179_p6 = por %p178_p5, %p177_p4 }
   0xd   :  { %p180_p7 = pnand %p179_p6, %p173_p3 }
   0xf   :  { %183 = shalt.err (!%p180_p7)
}
  0x10   :  { %s211_s19 = smov 128   ;;  %s212_s20 = smov 8  }
  0x11   :  { %22 = dma.hbm_to_vmem [thread:$0]  %s261_s1, 512, %s17_s10, [#allocation3], %s211_s19, %s211_s19, %s212_s20  }
  0x12   :  { %206 = dma.done.wait [#allocation3], 512  }
  0x13   :  { %207 = vsyncadd [#allocation3], 4294966784  ;;  %v213_v0 = vmov 0   ;;  %v214_v1 = vmov 0.0|0.0   ;;  %v26_v2 = vld [vmem:[%s260_s0] sm:$0xff]  ;;  %v36_v4 = vld [vmem:[#allocation2 + $0x8] sm:$0xff]  ;;  %v27_v10 = vlaneseq }
  0x14   :  { %161 = vset.pattern.permute.xlu0 %v213_v0  ;;  %147 = vmatprep.subr.bf16.mxu0 %v214_v1  ;;  %v35_v3 = vld [vmem:[#allocation2] sm:$0xff]  ;;  %v37_v6 = vld [vmem:[#allocation2 + $0x10] sm:$0xff]  ;;  %v38_v7 = vld [vmem:[#allocation2 + $0x18] sm:$0xff]  ;;  %vm215_vm0 = vmmov 0   ;;  %v216_v8 = vmov 0.0   ;;  %vm39_vm1 = vcmask 261120  }
  0x15   :  { %30 = vperm.xlu0 %161, %v26_v2   ;;  %v148_v5 = vpack.c.bf16 %v36_v4, %v35_v3  ;;  %144 = vmatprep.mubr.msk.f32.mxu0 %vm215_vm0, %v216_v8  ;;  %v151_v9 = vpack.c.bf16 %v38_v7, %v37_v6  ;;  %v28_v11 = vand.u32 127, %v27_v10  ;;  %s217_s0 = smov [#allocation5]  }
  0x16   :  { %s120_s1 = sshll.u32 %s217_s0, 4  ;;  %s121_s1 = int_to_ptr.vmem [resolvable:$true] %s120_s1 }
  0x17   :  { %149 = vmatpush3.bf16.msra.mxu0 %v148_v5  ;;  %s184_s25 = scalar_lea.vmem %s121_s1, 128  ;;  %p189_p9 = scmp.lt.s32.totalorder %s121_s1, %s121_s1 }
  0x18   :  { %150 = vmatprep.subr.bf16.mxu0 %v214_v1  ;;  %p185_p8 = scmp.ne.s32.totalorder %s121_s1, %s184_s25  ;;  %p190_p10 = scmp.lt.s32.totalorder %s184_s25, %s184_s25 }
  0x1a   :  { %p191_p11 = por %p190_p10, %p189_p9 }
  0x1b   :  { %152 = vmatpush3.bf16.msra.mxu0 %v151_v9 }
  0x1c   :  { %p192_p12 = pnand %p191_p11, %p185_p8 }
  0x94   :  { %v31_v12 = vpop.permute.xlu0 %30 }
  0x95   :  { %vm32_vm2 = vcmp.eq.s32.totalorder %v28_v11, %v31_v12 }
  0x96   :  { %v129_v13 = vsel %vm32_vm2, 1.0, %v216_v8 }
  0x97   :  { %145 = vmatmul.mubr.msk.f32.vlgmr.msra.gmra.mrb[0].mxu0 %vm39_vm1, %v129_v13 }
 0x16a   :  { %v109_v14 = vpop.f32.mrb[0].mxu0 }
 0x16b   :  { %113 = vst [vmem:[#allocation5] sm:$0xff] %v109_v14  ;;  %v146_v15 = vpop.f32.mrb[1].mxu0 }
 0x16c   :  { %195 = shalt.err (!%p192_p12)
}
 0x16d   :  { %s196_s28 = scalar_lea.hbm %s262_s2, 128 }
 0x16e   :  { %p197_p13 = scmp.ne.s32.totalorder %s262_s2, %s196_s28  ;;  %p200_p0 = scmp.lt.u32.totalorder %s196_s28, %s262_s2 }
 0x170   :  { %p202_p1 = pnand %p200_p0, %p197_p13 }
 0x172   :  { %205 = shalt.err (!%p202_p1)
}
 0x173   :  { %123 = dma.vmem_to_hbm [thread:$0]  %s121_s1, 128, %s262_s2, [#allocation4]  }
 0x174   :  { %208 = dma.done.wait [#allocation4], 128  }
 0x175   :  { %209 = vsyncadd [#allocation4], 4294967168 }
 0x176   :  { %127 = vsyncpa [#allocation3], 1 }
 0x177   :  { %128 = vsyncpa [#allocation4], 1 }

</bundles_post_ra>
